<compile_context>
chip_gen: v7x
topology: tpu7x:2x2x1
jax: 0.10.0
libtpu: 0.0.40
codegen_flags: <defaults>
</compile_context>

<pallas_src>
import math

import jax
import jax.numpy as jnp
from jax import lax
from jax.experimental import pallas as pl
from jax.experimental.pallas import tpu as pltpu

B, SQ, SK, D = 3, 5, 1, 4

_VMEM = pl.BlockSpec(memory_space=pltpu.MemorySpace.VMEM)
_HIGHEST = jax.lax.Precision.HIGHEST


def _attn_sk1_kernel(slab_ref, o_ref):
    """SK == 1 path.  slab = [value (B,D) ; wv.T (D,D) ; bias (1,D)] -> (B, D)."""
    b, d = o_ref.shape
    slab = slab_ref[...]                        # single (B+D+1, D) tile, one load
    v = slab[0:b, :]                            # (B, D)  value with SK squeezed
    w = slab[b:b + d, :]                        # (D, D)  W_v pre-transposed (in, out)
    bias = slab[b + d:b + d + 1, :]             # (1, D)  bias as a row add
    o_ref[...] = jnp.dot(v, w, precision=_HIGHEST,
                         preferred_element_type=jnp.float32) + bias


def _attn_general_kernel(p_ref, q_ref, k_ref, v_ref, mask_ref, o_ref):
    """General path, one batch element per grid step (all refs are 2-D)."""
    sq, d = q_ref.shape
    params = p_ref[...]                         # (D+1, 3D) packed weight/bias slab
    wq = params[0:d, 0:d]
    wk = params[0:d, d:2 * d]
    wv = params[0:d, 2 * d:3 * d]
    bq = params[d:d + 1, 0:d]
    bk = params[d:d + 1, d:2 * d]
    bv = params[d:d + 1, 2 * d:3 * d]

    qp = jnp.dot(q_ref[...], wq, precision=_HIGHEST,
                 preferred_element_type=jnp.float32) + bq          # (SQ, D)
    kp = jnp.dot(k_ref[...], wk, precision=_HIGHEST,
                 preferred_element_type=jnp.float32) + bk          # (SK, D)
    vp = jnp.dot(v_ref[...], wv, precision=_HIGHEST,
                 preferred_element_type=jnp.float32) + bv          # (SK, D)

    # q @ k^T via dot_general contracting on D (no explicit transpose).
    s = lax.dot_general(qp, kp, (((1,), (1,)), ((), ())),
                        precision=_HIGHEST,
                        preferred_element_type=jnp.float32) * (1.0 / math.sqrt(d))
    s = s + mask_ref[...]
    m = jnp.max(s, axis=-1, keepdims=True)
    p = jnp.exp(s - m)
    p = p / jnp.sum(p, axis=-1, keepdims=True)   # exact divide (per review)
    o_ref[...] = jnp.dot(p, vp, precision=_HIGHEST,
                         preferred_element_type=jnp.float32)


def attention_forward(query, key, value, params, attention_mask):
    """query (B,SQ,D), key/value (B,SK,D), attention_mask (B,SQ,SK) -> (B,SQ,D)."""
    wq, bq, wk, bk, wv, bv = params              # PyTorch Linear weights are (out, in)
    b, sq, d = query.shape
    sk = key.shape[1]

    if sk == 1:
        # Single packed operand => one DMA; 2-D (B, D) output; broadcast outside.
        slab = jnp.concatenate(
            [value.reshape(b, d), wv.T, bv.reshape(1, d)], axis=0)   # (B+D+1, D)
        vp = pl.pallas_call(
            _attn_sk1_kernel,
            out_shape=jax.ShapeDtypeStruct((b, d), jnp.float32),
            in_specs=[_VMEM],
            out_specs=_VMEM,
        )(slab)
        return jnp.broadcast_to(vp[:, None, :], (b, sq, d))

    # General path: batch on a parallel grid axis, one packed parameter slab.
    param_slab = jnp.concatenate(
        [jnp.concatenate([wq.T, wk.T, wv.T], axis=1),                # (D, 3D)
         jnp.concatenate([bq, bk, bv]).reshape(1, 3 * d)], axis=0)   # (D+1, 3D)

    return pl.pallas_call(
        _attn_general_kernel,
        out_shape=jax.ShapeDtypeStruct((b, sq, d), jnp.float32),
        grid_spec=pltpu.PrefetchScalarGridSpec(
            num_scalar_prefetch=0,
            grid=(b,),
            in_specs=[
                pl.BlockSpec((d + 1, 3 * d), lambda i: (0, 0)),      # params, resident
                pl.BlockSpec((None, sq, d), lambda i: (i, 0, 0)),    # query[b]
                pl.BlockSpec((None, sk, d), lambda i: (i, 0, 0)),    # key[b]
                pl.BlockSpec((None, sk, d), lambda i: (i, 0, 0)),    # value[b]
                pl.BlockSpec((None, sq, sk), lambda i: (i, 0, 0)),   # mask[b]
            ],
            out_specs=pl.BlockSpec((None, sq, d), lambda i: (i, 0, 0)),
        ),
        compiler_params=pltpu.CompilerParams(dimension_semantics=("parallel",)),
    )(param_slab, query, key, value, attention_mask.astype(jnp.float32))


def _reference(query, key, value, params, attention_mask):
    wq, bq, wk, bk, wv, bv = params
    qp = query @ wq.T + bq
    kp = key @ wk.T + bk
    vp = value @ wv.T + bv
    s = jnp.einsum('bqd,bkd->bqk', qp, kp) / math.sqrt(wq.shape[-1])
    s = s + attention_mask.astype(jnp.float32)
    p = jax.nn.softmax(s, axis=-1)
    return jnp.einsum('bqk,bkd->bqd', p, vp)


if __name__ == "__main__":
    root = jax.random.PRNGKey(0)
    k_in, k_w = jax.random.split(root)
    kq, kk, kv = jax.random.split(k_in, 3)
    kwq, kbq, kwk, kbk, kwv, kbv = jax.random.split(k_w, 6)

    # Inputs (same shapes as the PyTorch script)
    query = jax.random.normal(kq, (B, SQ, D), dtype=jnp.float32)
    key = jax.random.normal(kk, (B, SK, D), dtype=jnp.float32)
    value = jax.random.normal(kv, (B, SK, D), dtype=jnp.float32)
    attention_mask = jnp.zeros((B, SQ, SK), dtype=jnp.int32)   # torch.long zeros

    # Deterministic parameter init (torch.nn.Linear-style uniform)
    bound = 1.0 / math.sqrt(D)
    params = (
        jax.random.uniform(kwq, (D, D), jnp.float32, -bound, bound),
        jax.random.uniform(kbq, (D,), jnp.float32, -bound, bound),
        jax.random.uniform(kwk, (D, D), jnp.float32, -bound, bound),
        jax.random.uniform(kbk, (D,), jnp.float32, -bound, bound),
        jax.random.uniform(kwv, (D, D), jnp.float32, -bound, bound),
        jax.random.uniform(kbv, (D,), jnp.float32, -bound, bound),
    )

    out = attention_forward(query, key, value, params, attention_mask)
    jax.block_until_ready(out)

    ref = _reference(query, key, value, params, attention_mask)
    assert out.shape == (B, SQ, D)
    assert jnp.allclose(out, ref, atol=1e-5, rtol=1e-5)

    print("KERNEL_OK")
</pallas_src>

<mosaic_0001>
module attributes {stable_mosaic.version = 11 : i64} {
  func.func @_attn_sk1_kernel(%arg0: memref<8x4xf32, #tpu.memory_space<vmem>>, %arg1: memref<3x4xf32, #tpu.memory_space<vmem>>) attributes {dimension_semantics = [], scalar_prefetch = 0 : i64, scratch_operands = 0 : i64, tpu.core_type = #tpu.core_type<tc>} {
    %c0 = arith.constant 0 : index
    %c0_0 = arith.constant 0 : index
    %0 = vector.load %arg0[%c0, %c0_0] : memref<8x4xf32, #tpu.memory_space<vmem>>, vector<8x4xf32>
    %1 = vector.extract_strided_slice %0 {offsets = [0, 0], sizes = [3, 4], strides = [1, 1]} : vector<8x4xf32> to vector<3x4xf32>
    %2 = vector.extract_strided_slice %0 {offsets = [3, 0], sizes = [4, 4], strides = [1, 1]} : vector<8x4xf32> to vector<4x4xf32>
    %3 = vector.extract_strided_slice %0 {offsets = [7, 0], sizes = [1, 4], strides = [1, 1]} : vector<8x4xf32> to vector<1x4xf32>
    %cst = arith.constant dense<0.000000e+00> : vector<3x4xf32>
    %4 = tpu.matmul %1, %2, %cst {dimension_numbers = #tpu.dot_dimension_numbers<[1], [0], [0], [1], [0, 0, 1, 1], [], []>, precision = #tpu.contract_precision<fp32>} : vector<3x4xf32>, vector<4x4xf32>, vector<3x4xf32> -> vector<3x4xf32>
    %5 = vector.broadcast %3 : vector<1x4xf32> to vector<3x4xf32>
    %6 = arith.addf %4, %5 : vector<3x4xf32>
    %c0_1 = arith.constant 0 : index
    %c0_2 = arith.constant 0 : index
    %7 = vector.load %arg1[%c0_1, %c0_2] : memref<3x4xf32, #tpu.memory_space<vmem>>, vector<3x4xf32>
    tpu.vector_store %arg1[%c0_1, %c0_2], %6 {strides = array<i32>} : memref<3x4xf32, #tpu.memory_space<vmem>>, vector<3x4xf32>,
    return
  }
}

</mosaic_0001>

<bundles_post_ra>
// kernel: tpu_custom_call.1
= control target key start
LH: loop header
LB: loop body
LE: loop exit
PB: predicated region body
PF: predicated region fallthrough
CT: control target
= control target key end

     0   :  { %vm19_vm0 = vcmask 1043456   ;;  %vm16_vm1 = vcmask 31744   ;;  %v563_v1 = vmov 0.0   ;;  %vm564_vm2 = vmmov 0   ;;  %s597_s0 = inlined_call_operand.vmem [shape: f32[8,4], index: 0, kind: input, shape index: {}]   ;;  %s598_s1 = inlined_call_operand.hbm [shape: f32[3,4], index: 1, kind: output, shape index: {}]  }
   0x1   :  { %v9_v0 = vld [vmem:[%s597_s0] sm:$0xff]  ;;  %511 = vmatprep.subr.mxu0 %v563_v1  ;;  %513 = vmatprep.mubr.msk.f32.mxu0 %vm564_vm2, %v563_v1 }
   0x2   :  { %v15_v2 = vrot.slane %v9_v0, 3  ;;  %v17_v3 = vsel %vm16_vm1, %v9_v0, 0 }
   0x3   :  { %6 = vsyncpa [#allocation3], 0  ;;  %v88_v4 = vand.u32 4294901760, %v17_v3  ;;  %496 = vmatprep.subr.mxu1 %v563_v1  ;;  %498 = vmatprep.mubr.msk.f32.mxu1 %vm564_vm2, %v563_v1  ;;  %v10_v15 = vlaneseq  ;;  %s565_s0 = smov [#allocation2]   ;;  %vm468_vm3 = vcmask 26624  }
   0x4   :  { %v20_v5 = vsel %vm19_vm0, %v15_v2, 0  ;;  %s476_s8 = sshll.u32 %s565_s0, 4  ;;  %s477_s8 = int_to_ptr.vmem [resolvable:$true] %s476_s8 }
   0x5   :  { %v23_v6 = vand.u32 4294901760, %v20_v5  ;;  %v89_v7 = vsub.f32 %v17_v3, %v88_v4  ;;  %v11_v16 = vshrl.u32 %v10_v15, 7  ;;  %s539_s9 = scalar_lea.vmem %s477_s8, 64  ;;  %p544_p1 = scmp.lt.s32.totalorder %s477_s8, %s477_s8 }
   0x6   :  { %p540_p0 = scmp.ne.s32.totalorder %s477_s8, %s539_s9  ;;  %p545_p2 = scmp.lt.s32.totalorder %s539_s9, %s539_s9 }
   0x7   :  { %v100_v8 = vsub.f32 %v20_v5, %v23_v6  ;;  %512 = vmatpush3.msra.mxu0 %v23_v6  ;;  %v90_v9 = vand.u32 4294901760, %v89_v7  ;;  %497 = vmatpush3.msra.mxu1 %v23_v6  ;;  %v12_v17 = vsub.s32 7, %v11_v16 }
   0x8   :  { %501 = vmatprep.subr.mxu1 %v563_v1  ;;  %516 = vmatprep.subr.mxu0 %v563_v1  ;;  %p546_p3 = por %p545_p2, %p544_p1 }
   0x9   :  { %514 = vmatmul.mubr.f32.vlgmr.msra.gmra.mrb[0].mxu0 %v90_v9  ;;  %v91_v10 = vsub.f32 %v89_v7, %v90_v9  ;;  %v101_v11 = vand.u32 4294901760, %v100_v8  ;;  %v13_v20 = vrot.slane %v9_v0, %v12_v17 }
   0xa   :  { %518 = vmatprep.mubr.msk.f32.mxu0 %vm564_vm2, %v563_v1  ;;  %p547_p4 = pnand %p546_p3, %p540_p0 }
   0xb   :  { %v92_v12 = vand.u32 4294901760, %v91_v10  ;;  %v102_v13 = vsub.f32 %v100_v8, %v101_v11  ;;  %517 = vmatpush3.msra.mxu0 %v101_v11 }
   0xc   :  { %521 = vmatprep.subr.mxu0 %v563_v1 }
   0xd   :  { %499 = vmatmul.mubr.f32.vlgmr.msra.gmra.mrb[0].mxu1 %v92_v12  ;;  %v103_v14 = vand.u32 4294901760, %v102_v13 }
   0xe   :  { %503 = vmatprep.mubr.msk.f32.mxu1 %vm564_vm2, %v563_v1 }
   0xf   :  { %502 = vmatpush3.msra.mxu1 %v103_v14 }
  0x10   :  { %506 = vmatprep.subr.mxu1 %v563_v1 }
  0x11   :  { %519 = vmatmul.mubr.f32.vlgmr.msra.gmra.mrb[0].mxu0 %v88_v4 }
  0x12   :  { %522 = vmatpush3.msra.mxu0 %v23_v6  ;;  %523 = vmatprep.mubr.msk.f32.mxu0 %vm564_vm2, %v563_v1 }
  0x15   :  { %504 = vmatmul.mubr.f32.vlgmr.msra.gmra.mrb[0].mxu1 %v88_v4 }
  0x16   :  { %507 = vmatpush3.msra.mxu1 %v100_v8  ;;  %508 = vmatprep.mubr.msk.f32.mxu1 %vm564_vm2, %v563_v1 }
  0x19   :  { %524 = vmatmul.mubr.f32.vlgmr.msra.gmra.mrb[0].mxu0 %v88_v4 }
  0x1d   :  { %509 = vmatmul.mubr.f32.vlgmr.msra.gmra.mrb[0].mxu1 %v89_v7 }
  0xec   :  { %v464_v18 = vpop.f32.mrb[0].mxu0 }
  0xed   :  { %v525_v19 = vpop.f32.mrb[1].mxu0 }
  0xf0   :  { %v244_v21 = vpop.f32.mrb[0].mxu1 }
  0xf1   :  { %v526_v22 = vadd.f32 %v244_v21, %v13_v20  ;;  %v510_v23 = vpop.f32.mrb[1].mxu1 }
  0xf3   :  { %v527_v24 = vadd.f32 %v526_v22, %v464_v18 }
  0xf5   :  { %469 = vst.msk [vmem:[#allocation2] sm:$0x7] %vm468_vm3, %v527_v24 }
  0xf6   :  { %550 = shalt.err (!%p547_p4)
}
  0xf7   :  { %s551_s12 = scalar_lea.hbm %s598_s1, 64 }
  0xf8   :  { %p552_p5 = scmp.ne.s32.totalorder %s598_s1, %s551_s12  ;;  %p555_p6 = scmp.lt.u32.totalorder %s551_s12, %s598_s1 }
  0xfa   :  { %p557_p7 = pnand %p555_p6, %p552_p5 }
  0xfc   :  { %560 = shalt.err (!%p557_p7)
}
  0xfd   :  { %479 = dma.vmem_to_hbm [thread:$0]  %s477_s8, 64, %s598_s1, [#allocation3]  }
  0xfe   :  { %561 = dma.done.wait [#allocation3], 64  }
  0xff   :  { %562 = vsyncadd [#allocation3], 4294967232 }
 0x100   :  { %483 = vsyncpa [#allocation3], 1 }

</bundles_post_ra>
